<compile_context>
chip_gen: v7x
topology: tpu7x:2x2x1
jax: 0.10.0
libtpu: 0.0.40
codegen_flags: <defaults>
</compile_context>

<pallas_src>
import functools

import jax
import jax.numpy as jnp
from jax import lax
from jax.experimental import pallas as pl
from jax.experimental.pallas import tpu as pltpu


# ----------------------------- Pallas kernel -------------------------------

def fused_forward_kernel(x_ref, wc_ref, bc_ref, pool_ref, wh_ref, bh_ref,
                         o_ref):
    """Fused conv3x3(SAME, as im2col matmul) + bias + ReLU + avg-pool + head.

    x_ref   : [BHW, 9*C]  lane-dense im2col rows (SAME zero padding pre-baked)
    wc_ref  : [9*C, Fp]   conv weight, (ki,kj,c) -> Fp (F zero-padded to 128)
    bc_ref  : [1, Fp]
    pool_ref: [B, BHW]    per-image averaging matrix (1/HW inside own image)
    wh_ref  : [Fp, NCp]   head weight (zero-padded)
    bh_ref  : [1, NCp]
    o_ref   : [B, NCp]    lane-dense padded logits
    """
    # Conv as ONE MXU matmul over the full K=9*C contraction.
    feat = jnp.dot(x_ref[...], wc_ref[...],
                   preferred_element_type=jnp.float32)            # [BHW, Fp]
    feat = jnp.maximum(feat + bc_ref[...], 0.0)

    # Global average pool as an MXU matmul (keeps the 256-row reduction off
    # the XLU); the averaging matrix is a kernel input, not built in-kernel.
    pooled = jnp.dot(pool_ref[...], feat,
                     preferred_element_type=jnp.float32)          # [B, Fp]

    logits = jnp.dot(pooled, wh_ref[...],
                     preferred_element_type=jnp.float32) + bh_ref[...]
    o_ref[...] = logits


# ------------------------------ host wrapper -------------------------------

def hf_wrapper_forward(x_nchw, w_conv, b_conv, w_head, b_head):
    """Equivalent of HuggingfaceToTensorModelWrapper(model)(x) -> logits."""
    B, C, H, W = x_nchw.shape
    F = w_conv.shape[-1]
    NC = w_head.shape[-1]
    Fp = ((F + 127) // 128) * 128          # lane-dense conv features
    NCp = ((NC + 127) // 128) * 128        # lane-dense logits
    HW = H * W
    BHW = B * HW
    K = 9 * C

    # Lane-dense host im2col: NCHW -> NHWC, SAME zero-pad, 9 shifted views
    # concatenated along channels in (ki, kj, c) order to match the HWIO
    # weight reshape below.  72 KiB; fuses into a single copy under jit.
    x_nhwc = jnp.transpose(x_nchw, (0, 2, 3, 1)).astype(jnp.float32)
    x_p = jnp.pad(x_nhwc, ((0, 0), (1, 1), (1, 1), (0, 0)))
    patches = [x_p[:, ki:ki + H, kj:kj + W, :]
               for ki in range(3) for kj in range(3)]
    x_im2col = jnp.concatenate(patches, axis=-1).reshape(BHW, K)

    # Weights / bias zero-padded to lane-dense widths.
    wc = jnp.pad(w_conv.astype(jnp.float32).reshape(K, F),
                 ((0, 0), (0, Fp - F)))
    bc = jnp.pad(b_conv.astype(jnp.float32), (0, Fp - F)).reshape(1, Fp)
    wh = jnp.pad(w_head.astype(jnp.float32), ((0, Fp - F), (0, NCp - NC)))
    bh = jnp.pad(b_head.astype(jnp.float32), (0, NCp - NC)).reshape(1, NCp)

    # Per-image averaging matrix, built once on the host (B x BHW, 4 KiB).
    pool = (jnp.kron(jnp.eye(B, dtype=jnp.float32),
                     jnp.ones((1, HW), dtype=jnp.float32)) / HW)

    # Advisory cost estimate on useful (unpadded) work.
    flops = 2 * BHW * K * F + 2 * B * BHW * F + 2 * B * F * NC
    bytes_accessed = 4 * (x_im2col.size + wc.size + bc.size + pool.size
                          + wh.size + bh.size + B * NCp)

    logits_padded = pl.pallas_call(
        fused_forward_kernel,
        out_shape=jax.ShapeDtypeStruct((B, NCp), jnp.float32),
        grid=(1,),
        in_specs=[
            pl.BlockSpec((BHW, K), lambda i: (0, 0)),
            pl.BlockSpec((K, Fp), lambda i: (0, 0)),
            pl.BlockSpec((1, Fp), lambda i: (0, 0)),
            pl.BlockSpec((B, BHW), lambda i: (0, 0)),
            pl.BlockSpec((Fp, NCp), lambda i: (0, 0)),
            pl.BlockSpec((1, NCp), lambda i: (0, 0)),
        ],
        out_specs=pl.BlockSpec((B, NCp), lambda i: (0, 0)),
        compiler_params=pltpu.CompilerParams(
            dimension_semantics=("arbitrary",)),
        cost_estimate=pl.CostEstimate(flops=flops, transcendentals=0,
                                      bytes_accessed=bytes_accessed),
    )(x_im2col, wc, bc, pool, wh, bh)

    return logits_padded[:, :NC]


def reference_forward(x_nchw, w_conv, b_conv, w_head, b_head):
    """Pure-JAX reference of the synthetic model for correctness checking."""
    x_nhwc = jnp.transpose(x_nchw, (0, 2, 3, 1)).astype(jnp.float32)
    y = lax.conv_general_dilated(
        x_nhwc, w_conv, window_strides=(1, 1), padding="SAME",
        dimension_numbers=("NHWC", "HWIO", "NHWC"),
    ) + b_conv
    y = jnp.maximum(y, 0.0)
    pooled = jnp.mean(y, axis=(1, 2))
    return pooled @ w_head + b_head


# ---------------------------------- main ------------------------------------

if __name__ == "__main__":
    B, C, H, W = 2, 4, 16, 16
    F = 32            # conv output channels
    NUM_CLASSES = 10  # logits width

    key = jax.random.PRNGKey(0)
    kx, kw1, kb1, kw2, kb2 = jax.random.split(key, 5)

    x = jax.random.normal(kx, (B, C, H, W), dtype=jnp.float32)              # NCHW input
    w_conv = jax.random.normal(kw1, (3, 3, C, F), dtype=jnp.float32) * 0.1  # HWIO
    b_conv = jax.random.normal(kb1, (F,), dtype=jnp.float32) * 0.1
    w_head = jax.random.normal(kw2, (F, NUM_CLASSES), dtype=jnp.float32) * 0.1
    b_head = jax.random.normal(kb2, (NUM_CLASSES,), dtype=jnp.float32) * 0.1

    logits = jax.jit(hf_wrapper_forward)(x, w_conv, b_conv, w_head, b_head)
    logits = jax.block_until_ready(logits)

    ref = reference_forward(x, w_conv, b_conv, w_head, b_head)
    assert logits.shape == (B, NUM_CLASSES)
    assert jnp.allclose(logits, ref, atol=1e-4, rtol=1e-4), "mismatch vs reference"

    print("KERNEL_OK")
</pallas_src>

<mosaic_0001>
module attributes {stable_mosaic.version = 11 : i64} {
  func.func @fused_forward_kernel(%arg0: i32, %arg1: memref<512x36xf32, #tpu.memory_space<vmem>>, %arg2: memref<36x128xf32, #tpu.memory_space<vmem>>, %arg3: memref<1x128xf32, #tpu.memory_space<vmem>>, %arg4: memref<2x512xf32, #tpu.memory_space<vmem>>, %arg5: memref<128x128xf32, #tpu.memory_space<vmem>>, %arg6: memref<1x128xf32, #tpu.memory_space<vmem>>, %arg7: memref<2x128xf32, #tpu.memory_space<vmem>>) attributes {dimension_semantics = [#tpu.dimension_semantics<arbitrary>], iteration_bounds = array<i64: 1>, scalar_prefetch = 0 : i64, scratch_operands = 0 : i64, tpu.core_type = #tpu.core_type<tc>, window_params = [{pipeline_mode = #tpu.pipeline_mode<synchronous>, transform_indices = @transform_0, window_bounds = array<i64: 512, 36>}, {pipeline_mode = #tpu.pipeline_mode<synchronous>, transform_indices = @transform_1, window_bounds = array<i64: 36, 128>}, {pipeline_mode = #tpu.pipeline_mode<synchronous>, transform_indices = @transform_2, window_bounds = array<i64: 1, 128>}, {pipeline_mode = #tpu.pipeline_mode<synchronous>, transform_indices = @transform_3, window_bounds = array<i64: 2, 512>}, {pipeline_mode = #tpu.pipeline_mode<synchronous>, transform_indices = @transform_4, window_bounds = array<i64: 128, 128>}, {pipeline_mode = #tpu.pipeline_mode<synchronous>, transform_indices = @transform_5, window_bounds = array<i64: 1, 128>}, {pipeline_mode = #tpu.pipeline_mode<synchronous>, transform_indices = @transform_6, window_bounds = array<i64: 2, 128>}]} {
    %c0 = arith.constant 0 : index
    %c0_0 = arith.constant 0 : index
    %0 = vector.load %arg1[%c0, %c0_0] : memref<512x36xf32, #tpu.memory_space<vmem>>, vector<512x36xf32>
    %c0_1 = arith.constant 0 : index
    %c0_2 = arith.constant 0 : index
    %1 = vector.load %arg2[%c0_1, %c0_2] : memref<36x128xf32, #tpu.memory_space<vmem>>, vector<36x128xf32>
    %cst = arith.constant dense<0.000000e+00> : vector<512x128xf32>
    %2 = tpu.matmul %0, %1, %cst {dimension_numbers = #tpu.dot_dimension_numbers<[1], [0], [0], [1], [0, 0, 1, 1], [], []>} : vector<512x36xf32>, vector<36x128xf32>, vector<512x128xf32> -> vector<512x128xf32>
    %c0_3 = arith.constant 0 : index
    %c0_4 = arith.constant 0 : index
    %3 = vector.load %arg3[%c0_3, %c0_4] : memref<1x128xf32, #tpu.memory_space<vmem>>, vector<1x128xf32>
    %4 = vector.broadcast %3 : vector<1x128xf32> to vector<512x128xf32>
    %5 = arith.addf %2, %4 : vector<512x128xf32>
    %cst_5 = arith.constant 0.000000e+00 : f32
    %6 = vector.broadcast %cst_5 : f32 to vector<512x128xf32>
    %7 = arith.maximumf %5, %6 : vector<512x128xf32>
    %c0_6 = arith.constant 0 : index
    %c0_7 = arith.constant 0 : index
    %8 = vector.load %arg4[%c0_6, %c0_7] : memref<2x512xf32, #tpu.memory_space<vmem>>, vector<2x512xf32>
    %cst_8 = arith.constant dense<0.000000e+00> : vector<2x128xf32>
    %9 = tpu.matmul %8, %7, %cst_8 {dimension_numbers = #tpu.dot_dimension_numbers<[1], [0], [0], [1], [0, 0, 1, 1], [], []>} : vector<2x512xf32>, vector<512x128xf32>, vector<2x128xf32> -> vector<2x128xf32>
    %c0_9 = arith.constant 0 : index
    %c0_10 = arith.constant 0 : index
    %10 = vector.load %arg5[%c0_9, %c0_10] : memref<128x128xf32, #tpu.memory_space<vmem>>, vector<128x128xf32>
    %cst_11 = arith.constant dense<0.000000e+00> : vector<2x128xf32>
    %11 = tpu.matmul %9, %10, %cst_11 {dimension_numbers = #tpu.dot_dimension_numbers<[1], [0], [0], [1], [0, 0, 1, 1], [], []>} : vector<2x128xf32>, vector<128x128xf32>, vector<2x128xf32> -> vector<2x128xf32>
    %c0_12 = arith.constant 0 : index
    %c0_13 = arith.constant 0 : index
    %12 = vector.load %arg6[%c0_12, %c0_13] : memref<1x128xf32, #tpu.memory_space<vmem>>, vector<1x128xf32>
    %13 = vector.broadcast %12 : vector<1x128xf32> to vector<2x128xf32>
    %14 = arith.addf %11, %13 : vector<2x128xf32>
    %c0_14 = arith.constant 0 : index
    %c0_15 = arith.constant 0 : index
    %15 = vector.load %arg7[%c0_14, %c0_15] : memref<2x128xf32, #tpu.memory_space<vmem>>, vector<2x128xf32>
    tpu.vector_store %arg7[%c0_14, %c0_15], %14 {strides = array<i32>} : memref<2x128xf32, #tpu.memory_space<vmem>>, vector<2x128xf32>,
    return
  }
  func.func @transform_0(%arg0: i32) -> (i32, i32) {
    %c0_i32 = arith.constant 0 : i32
    %c0_i32_0 = arith.constant 0 : i32
    %c0_i32_1 = arith.constant 0 : i32
    return %c0_i32, %c0_i32_0 : i32, i32
  }
  func.func @transform_1(%arg0: i32) -> (i32, i32) {
    %c0_i32 = arith.constant 0 : i32
    %c0_i32_0 = arith.constant 0 : i32
    %c0_i32_1 = arith.constant 0 : i32
    return %c0_i32, %c0_i32_0 : i32, i32
  }
  func.func @transform_2(%arg0: i32) -> (i32, i32) {
    %c0_i32 = arith.constant 0 : i32
    %c0_i32_0 = arith.constant 0 : i32
    %c0_i32_1 = arith.constant 0 : i32
    return %c0_i32, %c0_i32_0 : i32, i32
  }
  func.func @transform_3(%arg0: i32) -> (i32, i32) {
    %c0_i32 = arith.constant 0 : i32
    %c0_i32_0 = arith.constant 0 : i32
    %c0_i32_1 = arith.constant 0 : i32
    return %c0_i32, %c0_i32_0 : i32, i32
  }
  func.func @transform_4(%arg0: i32) -> (i32, i32) {
    %c0_i32 = arith.constant 0 : i32
    %c0_i32_0 = arith.constant 0 : i32
    %c0_i32_1 = arith.constant 0 : i32
    return %c0_i32, %c0_i32_0 : i32, i32
  }
  func.func @transform_5(%arg0: i32) -> (i32, i32) {
    %c0_i32 = arith.constant 0 : i32
    %c0_i32_0 = arith.constant 0 : i32
    %c0_i32_1 = arith.constant 0 : i32
    return %c0_i32, %c0_i32_0 : i32, i32
  }
  func.func @transform_6(%arg0: i32) -> (i32, i32) {
    %c0_i32 = arith.constant 0 : i32
    %c0_i32_0 = arith.constant 0 : i32
    %c0_i32_1 = arith.constant 0 : i32
    return %c0_i32, %c0_i32_0 : i32, i32
  }
}

</mosaic_0001>

<bundles_post_ra>
// kernel: hf_wrapper_forward.1
= control target key start
LH: loop header
LB: loop body
LE: loop exit
PB: predicated region body
PF: predicated region fallthrough
CT: control target
= control target key end

     0   :  { %vm100_vm0 = vcmask 293888   ;;  %vm293_vm1 = vcmask 1043456   ;;  %s2008_s0 = inlined_call_operand.vmem [shape: f32[512,36], index: 0, kind: input, shape index: {}]   ;;  %s2009_s1 = inlined_call_operand.vmem [shape: f32[36,128], index: 1, kind: input, shape index: {}]   ;;  %s2010_s2 = inlined_call_operand.vmem [shape: f32[1,128], index: 2, kind: input, shape index: {}]   ;;  %s2011_s3 = inlined_call_operand.vmem [shape: f32[2,512], index: 3, kind: input, shape index: {}]   ;;  %s2012_s4 = inlined_call_operand.vmem [shape: f32[128,128], index: 4, kind: input, shape index: {}]   ;;  %s2013_s5 = inlined_call_operand.vmem [shape: f32[1,128], index: 5, kind: input, shape index: {}]   ;;  %s2014_s6 = inlined_call_operand.hbm [shape: f32[2,128], index: 6, kind: output, shape index: {}]  }
   0x1   :  { %v88_v0 = vld [vmem:[%s2009_s1] sm:$0xff]  ;;  %v89_v1 = vld [vmem:[%s2009_s1 + $0x8] sm:$0xff]  ;;  %v90_v2 = vld [vmem:[%s2009_s1 + $0x10] sm:$0xff] }
   0x2   :  { %v1381_v3 = vpack.c.bf16 %v89_v1, %v88_v0  ;;  %v91_v4 = vld [vmem:[%s2009_s1 + $0x18] sm:$0xff]  ;;  %v24_v5 = vld [vmem:[%s2008_s0] sm:$0xff]  ;;  %v25_v8 = vld [vmem:[%s2008_s0 + $0x8] sm:$0xff] }
   0x3   :  { %v1385_v6 = vpack.c.bf16 %v91_v4, %v90_v2  ;;  %1250 = vmatprep.mubr.msk.f32.mxu0 %vm100_vm0, %v24_v5  ;;  %v92_v7 = vld [vmem:[%s2009_s1 + $0x20] sm:$0xf]  ;;  %v26_v9 = vld [vmem:[%s2008_s0 + $0x10] sm:$0xff]  ;;  %v27_v10 = vld [vmem:[%s2008_s0 + $0x18] sm:$0xff] }
   0x4   :  { %1382 = vmatprep.subr.bf16.mxu0 %v1381_v3  ;;  %v28_v11 = vld [vmem:[%s2008_s0 + $0x20] sm:$0xff]  ;;  %v29_v12 = vld [vmem:[%s2008_s0 + $0x28] sm:$0xff]  ;;  %v30_v13 = vld [vmem:[%s2008_s0 + $0x30] sm:$0xff] }
   0x5   :  { %1384 = vmatpush3.bf16.msra.mxu0 %v1381_v3  ;;  %v31_v14 = vld [vmem:[%s2008_s0 + $0x38] sm:$0xff]  ;;  %v32_v15 = vld [vmem:[%s2008_s0 + $0x40] sm:$0xff] }
   0x6   :  { %1386 = vmatprep.subr.bf16.mxu0 %v1385_v6 }
   0x9   :  { %1388 = vmatpush3.bf16.msra.mxu0 %v1385_v6 }
   0xa   :  { %1248 = vmatprep.subr.msk.mxu0 %vm293_vm1, %v92_v7 }
   0xd   :  { %1249 = vmatpush3.msk.msra.mxu0 %vm293_vm1, %v92_v7 }
   0xe   :  { %1251 = vmatmul.mubr.msk.f32.vlgmr.msra.gmra.mrb[0].mxu0 %vm100_vm0, %v25_v8 }
   0xf   :  { %1253 = vmatprep.mubr.msk.f32.mxu0 %vm100_vm0, %v26_v9 }
  0x12   :  { %1254 = vmatmul.mubr.msk.f32.gmra.mrb[2].mxu0 %vm100_vm0, %v27_v10 }
  0x13   :  { %1256 = vmatprep.mubr.msk.f32.mxu0 %vm100_vm0, %v28_v11 }
  0x16   :  { %1257 = vmatmul.mubr.msk.f32.gmra.mrb[4].mxu0 %vm100_vm0, %v29_v12 }
  0x17   :  { %1259 = vmatprep.mubr.msk.f32.mxu0 %vm100_vm0, %v30_v13 }
  0x18   :  { %11 = vsyncpa [#allocation3], 0  ;;  %v33_v16 = vld [vmem:[%s2008_s0 + $0x48] sm:$0xff]  ;;  %v34_v17 = vld [vmem:[%s2008_s0 + $0x50] sm:$0xff]  ;;  %v1507_v7 = vmov 1983009808   ;;  %v752_v9 = vlaneseq }
  0x19   :  { %v35_v18 = vld [vmem:[%s2008_s0 + $0x58] sm:$0xff]  ;;  %v36_v19 = vld [vmem:[%s2008_s0 + $0x60] sm:$0xff]  ;;  %v37_v20 = vld [vmem:[%s2008_s0 + $0x68] sm:$0xff]  ;;  %v750_v8 = vunpack.c.l.s4 %v1507_v7  ;;  %vm1509_vm2 = vmmov 0   ;;  %s1511_s16 = smov [#allocation2]  }
  0x1a   :  { %1260 = vmatmul.mubr.msk.f32.gmra.mrb[6].mxu0 %vm100_vm0, %v31_v14  ;;  %v38_v21 = vld [vmem:[%s2008_s0 + $0x70] sm:$0xff]  ;;  %v39_v22 = vld [vmem:[%s2008_s0 + $0x78] sm:$0xff]  ;;  %v40_v23 = vld [vmem:[%s2008_s0 + $0x80] sm:$0xff]  ;;  %v753_v11 = vshrl.u32 %v752_v9, 7  ;;  %s1009_s17 = sshll.u32 %s1511_s16, 4  ;;  %s1010_s17 = int_to_ptr.vmem [resolvable:$true] %s1009_s17 }
  0x1b   :  { %1262 = vmatprep.mubr.msk.f32.mxu0 %vm100_vm0, %v32_v15  ;;  %v41_v24 = vld [vmem:[%s2008_s0 + $0x88] sm:$0xff]  ;;  %v42_v25 = vld [vmem:[%s2008_s0 + $0x90] sm:$0xff]  ;;  %v43_v26 = vld [vmem:[%s2008_s0 + $0x98] sm:$0xff]  ;;  %v751_v10 = vunpack.c.0.s8 %v750_v8  ;;  %p1488_p1 = scmp.lt.s32.totalorder %s1010_s17, %s1010_s17 }
  0x1c   :  { %v44_v27 = vld [vmem:[%s2008_s0 + $0xa0] sm:$0xff]  ;;  %v45_v28 = vld [vmem:[%s2008_s0 + $0xa8] sm:$0xff]  ;;  %v46_v29 = vld [vmem:[%s2008_s0 + $0xb0] sm:$0xff] }
  0x1d   :  { %v47_v30 = vld [vmem:[%s2008_s0 + $0xb8] sm:$0xff]  ;;  %v48_v31 = vld [vmem:[%s2008_s0 + $0xc0] sm:$0xff]  ;;  %v49_v32 = vld [vmem:[%s2008_s0 + $0xc8] sm:$0xff]  ;;  %v754_v12 = vsub.s32 %v751_v10, %v753_v11 }
  0x1e   :  { %1263 = vmatmul.mubr.msk.f32.gmra.mrb[8].mxu0 %vm100_vm0, %v33_v16  ;;  %v50_v33 = vld [vmem:[%s2008_s0 + $0xd0] sm:$0xff]  ;;  %v51_v34 = vld [vmem:[%s2008_s0 + $0xd8] sm:$0xff]  ;;  %v52_v35 = vld [vmem:[%s2008_s0 + $0xe0] sm:$0xff] }
  0x1f   :  { %1265 = vmatprep.mubr.msk.f32.mxu0 %vm100_vm0, %v34_v17  ;;  %v53_v36 = vld [vmem:[%s2008_s0 + $0xe8] sm:$0xff]  ;;  %v54_v37 = vld [vmem:[%s2008_s0 + $0xf0] sm:$0xff]  ;;  %v55_v38 = vld [vmem:[%s2008_s0 + $0xf8] sm:$0xff] }
  0x20   :  { %v56_v39 = vld [vmem:[%s2008_s0 + $0x100] sm:$0xff]  ;;  %v57_v40 = vld [vmem:[%s2008_s0 + $0x108] sm:$0xff]  ;;  %v58_v41 = vld [vmem:[%s2008_s0 + $0x110] sm:$0xff] }
  0x21   :  { %v59_v42 = vld [vmem:[%s2008_s0 + $0x118] sm:$0xff]  ;;  %v60_v43 = vld [vmem:[%s2008_s0 + $0x120] sm:$0xff]  ;;  %v61_v44 = vld [vmem:[%s2008_s0 + $0x128] sm:$0xff] }
  0x22   :  { %1266 = vmatmul.mubr.msk.f32.gmra.mrb[10].mxu0 %vm100_vm0, %v35_v18  ;;  %v62_v45 = vld [vmem:[%s2008_s0 + $0x130] sm:$0xff]  ;;  %v63_v46 = vld [vmem:[%s2008_s0 + $0x138] sm:$0xff]  ;;  %v64_v47 = vld [vmem:[%s2008_s0 + $0x140] sm:$0xff] }
  0x23   :  { %1268 = vmatprep.mubr.msk.f32.mxu0 %vm100_vm0, %v36_v19  ;;  %v65_v48 = vld [vmem:[%s2008_s0 + $0x148] sm:$0xff]  ;;  %v66_v49 = vld [vmem:[%s2008_s0 + $0x150] sm:$0xff]  ;;  %v67_v50 = vld [vmem:[%s2008_s0 + $0x158] sm:$0xff] }
  0x24   :  { %v68_v51 = vld [vmem:[%s2008_s0 + $0x160] sm:$0xff]  ;;  %v69_v52 = vld [vmem:[%s2008_s0 + $0x168] sm:$0xff]  ;;  %v70_v53 = vld [vmem:[%s2008_s0 + $0x170] sm:$0xff] }
  0x25   :  { %v71_v54 = vld [vmem:[%s2008_s0 + $0x178] sm:$0xff]  ;;  %v72_v55 = vld [vmem:[%s2008_s0 + $0x180] sm:$0xff]  ;;  %v73_v56 = vld [vmem:[%s2008_s0 + $0x188] sm:$0xff] }
  0x26   :  { %1269 = vmatmul.mubr.msk.f32.gmra.mrb[12].mxu0 %vm100_vm0, %v37_v20  ;;  %v74_v57 = vld [vmem:[%s2008_s0 + $0x190] sm:$0xff]  ;;  %v75_v58 = vld [vmem:[%s2008_s0 + $0x198] sm:$0xff]  ;;  %v76_v59 = vld [vmem:[%s2008_s0 + $0x1a0] sm:$0xff] }
  0x27   :  { %1271 = vmatprep.mubr.msk.f32.mxu0 %vm100_vm0, %v38_v21  ;;  %v77_v60 = vld [vmem:[%s2008_s0 + $0x1a8] sm:$0xff]  ;;  %v78_v61 = vld [vmem:[%s2008_s0 + $0x1b0] sm:$0xff]  ;;  %v79_v62 = vld [vmem:[%s2008_s0 + $0x1b8] sm:$0xff] }
  0x28   :  { %v80_v63 = vld [vmem:[%s2008_s0 + $0x1c0] sm:$0xff]  ;;  %v81_v0 = vld [vmem:[%s2008_s0 + $0x1c8] sm:$0xff]  ;;  %v82_v1 = vld [vmem:[%s2008_s0 + $0x1d0] sm:$0xff] }
  0x29   :  { %v83_v2 = vld [vmem:[%s2008_s0 + $0x1d8] sm:$0xff]  ;;  %v84_v3 = vld [vmem:[%s2008_s0 + $0x1e0] sm:$0xff]  ;;  %v85_v4 = vld [vmem:[%s2008_s0 + $0x1e8] sm:$0xff] }
  0x2a   :  { %1272 = vmatmul.mubr.msk.f32.gmra.mrb[14].mxu0 %vm100_vm0, %v39_v22  ;;  %v86_v5 = vld [vmem:[%s2008_s0 + $0x1f0] sm:$0xff]  ;;  %v87_v6 = vld [vmem:[%s2008_s0 + $0x1f8] sm:$0xff]  ;;  %v746_v13 = vld [vmem:[%s2011_s3] sm:$0xff] }
  0x2b   :  { %1274 = vmatprep.mubr.msk.f32.mxu0 %vm100_vm0, %v40_v23  ;;  %v1821_v14 = vrot.slane %v746_v13, %v754_v12  ;;  %v1828_v16 = vld [vmem:[%s2010_s2] ss:$0 sm:$0xff]  ;;  %v748_v17 = vcombine.high %v746_v13, %v746_v13 }
  0x2d   :  { %v763_v15 = vcombine.high %v1821_v14, %v1821_v14  ;;  %v1832_v23 = vrot.slane %v748_v17, %v754_v12 }
  0x2e   :  { %1275 = vmatmul.mubr.msk.f32.gmra.mrb[16].mxu0 %vm100_vm0, %v41_v24 }
  0x2f   :  { %1277 = vmatprep.mubr.msk.f32.mxu0 %vm100_vm0, %v42_v25  ;;  %833 = vmatprep.mubr.f32.mxu1 %v763_v15 }
  0x32   :  { %1278 = vmatmul.mubr.msk.f32.gmra.mrb[18].mxu0 %vm100_vm0, %v43_v26 }
  0x33   :  { %1280 = vmatprep.mubr.msk.f32.mxu0 %vm100_vm0, %v44_v27 }
  0x36   :  { %1281 = vmatmul.mubr.msk.f32.gmra.mrb[20].mxu0 %vm100_vm0, %v45_v28 }
  0x37   :  { %1283 = vmatprep.mubr.msk.f32.mxu0 %vm100_vm0, %v46_v29 }
  0x3a   :  { %1284 = vmatmul.mubr.msk.f32.gmra.mrb[22].mxu0 %vm100_vm0, %v47_v30 }
  0x3b   :  { %1286 = vmatprep.mubr.msk.f32.mxu0 %vm100_vm0, %v48_v31 }
  0x3e   :  { %1287 = vmatmul.mubr.msk.f32.gmra.mrb[24].mxu0 %vm100_vm0, %v49_v32 }
  0x3f   :  { %1289 = vmatprep.mubr.msk.f32.mxu0 %vm100_vm0, %v50_v33 }
  0x42   :  { %1290 = vmatmul.mubr.msk.f32.gmra.mrb[26].mxu0 %vm100_vm0, %v51_v34 }
  0x43   :  { %1292 = vmatprep.mubr.msk.f32.mxu0 %vm100_vm0, %v52_v35 }
  0x46   :  { %1293 = vmatmul.mubr.msk.f32.gmra.mrb[28].mxu0 %vm100_vm0, %v53_v36 }
  0x47   :  { %1295 = vmatprep.mubr.msk.f32.mxu0 %vm100_vm0, %v54_v37 }
  0x4a   :  { %1296 = vmatmul.mubr.msk.f32.gmra.mrb[30].mxu0 %vm100_vm0, %v55_v38 }
  0x4b   :  { %1298 = vmatprep.mubr.msk.f32.mxu0 %vm100_vm0, %v56_v39 }
  0x4e   :  { %1299 = vmatmul.mubr.msk.f32.gmra.mrb[32].mxu0 %vm100_vm0, %v57_v40 }
  0x4f   :  { %1301 = vmatprep.mubr.msk.f32.mxu0 %vm100_vm0, %v58_v41 }
  0x52   :  { %1302 = vmatmul.mubr.msk.f32.gmra.mrb[34].mxu0 %vm100_vm0, %v59_v42 }
  0x53   :  { %1304 = vmatprep.mubr.msk.f32.mxu0 %vm100_vm0, %v60_v43 }
  0x56   :  { %1305 = vmatmul.mubr.msk.f32.gmra.mrb[36].mxu0 %vm100_vm0, %v61_v44 }
  0x57   :  { %1307 = vmatprep.mubr.msk.f32.mxu0 %vm100_vm0, %v62_v45 }
  0x5a   :  { %1308 = vmatmul.mubr.msk.f32.gmra.mrb[38].mxu0 %vm100_vm0, %v63_v46 }
  0x5b   :  { %1310 = vmatprep.mubr.msk.f32.mxu0 %vm100_vm0, %v64_v47 }
  0x5e   :  { %1311 = vmatmul.mubr.msk.f32.gmra.mrb[40].mxu0 %vm100_vm0, %v65_v48 }
  0x5f   :  { %1313 = vmatprep.mubr.msk.f32.mxu0 %vm100_vm0, %v66_v49 }
  0x62   :  { %1314 = vmatmul.mubr.msk.f32.gmra.mrb[42].mxu0 %vm100_vm0, %v67_v50 }
  0x63   :  { %1316 = vmatprep.mubr.msk.f32.mxu0 %vm100_vm0, %v68_v51 }
  0x66   :  { %1317 = vmatmul.mubr.msk.f32.gmra.mrb[44].mxu0 %vm100_vm0, %v69_v52 }
  0x67   :  { %1319 = vmatprep.mubr.msk.f32.mxu0 %vm100_vm0, %v70_v53 }
  0x6a   :  { %1320 = vmatmul.mubr.msk.f32.gmra.mrb[46].mxu0 %vm100_vm0, %v71_v54 }
  0x6b   :  { %1322 = vmatprep.mubr.msk.f32.mxu0 %vm100_vm0, %v72_v55 }
  0x6e   :  { %1323 = vmatmul.mubr.msk.f32.gmra.mrb[48].mxu0 %vm100_vm0, %v73_v56 }
  0x6f   :  { %1325 = vmatprep.mubr.msk.f32.mxu0 %vm100_vm0, %v74_v57 }
  0x72   :  { %1326 = vmatmul.mubr.msk.f32.gmra.mrb[50].mxu0 %vm100_vm0, %v75_v58 }
  0x73   :  { %1328 = vmatprep.mubr.msk.f32.mxu0 %vm100_vm0, %v76_v59 }
  0x76   :  { %1329 = vmatmul.mubr.msk.f32.gmra.mrb[52].mxu0 %vm100_vm0, %v77_v60 }
  0x77   :  { %1331 = vmatprep.mubr.msk.f32.mxu0 %vm100_vm0, %v78_v61 }
  0x7a   :  { %1332 = vmatmul.mubr.msk.f32.gmra.mrb[54].mxu0 %vm100_vm0, %v79_v62 }
  0x7b   :  { %1334 = vmatprep.mubr.msk.f32.mxu0 %vm100_vm0, %v80_v63 }
  0x7e   :  { %1335 = vmatmul.mubr.msk.f32.gmra.mrb[56].mxu0 %vm100_vm0, %v81_v0 }
  0x7f   :  { %1337 = vmatprep.mubr.msk.f32.mxu0 %vm100_vm0, %v82_v1 }
  0x82   :  { %1338 = vmatmul.mubr.msk.f32.gmra.mrb[58].mxu0 %vm100_vm0, %v83_v2 }
  0x83   :  { %1340 = vmatprep.mubr.msk.f32.mxu0 %vm100_vm0, %v84_v3 }
  0x86   :  { %1341 = vmatmul.mubr.msk.f32.gmra.mrb[60].mxu0 %vm100_vm0, %v85_v4 }
  0x87   :  { %1343 = vmatprep.mubr.msk.f32.mxu0 %vm100_vm0, %v86_v5 }
  0x8a   :  { %1344 = vmatmul.mubr.msk.f32.gmra.mrb[62].mxu0 %vm100_vm0, %v87_v6 }
  0xe1   :  { %v1252_v18 = vpop.f32.mrb[0].mxu0 }
  0xe2   :  { %v369_v19 = vadd.f32 %v1252_v18, %v1828_v16  ;;  %v363_v20 = vpop.f32.mrb[1].mxu0 }
  0xe3   :  { %v364_v21 = vadd.f32 %v1828_v16, %v363_v20 }
  0xe4   :  { %v683_v22 = vmax.f32 %v369_v19, 0.0 }
  0xe5   :  { %v682_v24 = vmax.f32 %v364_v21, 0.0  ;;  %v1255_v25 = vpop.f32.mrb[2].mxu0 }
  0xe6   :  { %v379_v26 = vadd.f32 %v1255_v25, %v1828_v16  ;;  %v373_v27 = vpop.f32.mrb[3].mxu0 }
  0xe7   :  { %v374_v28 = vadd.f32 %v1828_v16, %v373_v27  ;;  %v1391_v29 = vpack.c.bf16 %v683_v22, %v682_v24 }
  0xe8   :  { %v685_v30 = vmax.f32 %v379_v26, 0.0 }
  0xe9   :  { %v684_v31 = vmax.f32 %v374_v28, 0.0  ;;  %v1258_v32 = vpop.f32.mrb[4].mxu0 }
  0xea   :  { %v389_v33 = vadd.f32 %v1258_v32, %v1828_v16  ;;  %v383_v34 = vpop.f32.mrb[5].mxu0 }
  0xeb   :  { %v1837_v35 = vpack.c.bf16 %v685_v30, %v684_v31  ;;  %v384_v36 = vadd.f32 %v1828_v16, %v383_v34 }
  0xec   :  { %v687_v37 = vmax.f32 %v389_v33, 0.0 }
  0xed   :  { %v686_v38 = vmax.f32 %v384_v36, 0.0  ;;  %v1261_v39 = vpop.f32.mrb[6].mxu0 }
  0xee   :  { %v399_v40 = vadd.f32 %v1261_v39, %v1828_v16  ;;  %v393_v41 = vpop.f32.mrb[7].mxu0 }
  0xef   :  { %v1841_v42 = vpack.c.bf16 %v687_v37, %v686_v38  ;;  %v394_v43 = vadd.f32 %v1828_v16, %v393_v41 }
  0xf0   :  { %v689_v44 = vmax.f32 %v399_v40, 0.0 }
  0xf1   :  { %v688_v45 = vmax.f32 %v394_v43, 0.0  ;;  %v1264_v46 = vpop.f32.mrb[8].mxu0 }
  0xf2   :  { %v409_v47 = vadd.f32 %v1264_v46, %v1828_v16  ;;  %v403_v48 = vpop.f32.mrb[9].mxu0 }
  0xf3   :  { %v1845_v49 = vpack.c.bf16 %v689_v44, %v688_v45  ;;  %v404_v50 = vadd.f32 %v1828_v16, %v403_v48 }
  0xf4   :  { %v691_v51 = vmax.f32 %v409_v47, 0.0 }
  0xf5   :  { %v690_v52 = vmax.f32 %v404_v50, 0.0  ;;  %v1267_v53 = vpop.f32.mrb[10].mxu0 }
  0xf6   :  { %v419_v54 = vadd.f32 %v1267_v53, %v1828_v16  ;;  %v413_v55 = vpop.f32.mrb[11].mxu0 }
  0xf7   :  { %v1849_v56 = vpack.c.bf16 %v691_v51, %v690_v52  ;;  %v414_v57 = vadd.f32 %v1828_v16, %v413_v55 }
  0xf8   :  { %v693_v58 = vmax.f32 %v419_v54, 0.0 }
  0xf9   :  { %v692_v59 = vmax.f32 %v414_v57, 0.0  ;;  %v1270_v60 = vpop.f32.mrb[12].mxu0 }
  0xfa   :  { %v429_v61 = vadd.f32 %v1270_v60, %v1828_v16  ;;  %v423_v62 = vpop.f32.mrb[13].mxu0 }
  0xfb   :  { %v1853_v63 = vpack.c.bf16 %v693_v58, %v692_v59  ;;  %v424_v0 = vadd.f32 %v1828_v16, %v423_v62 }
  0xfc   :  { %v695_v1 = vmax.f32 %v429_v61, 0.0 }
  0xfd   :  { %v694_v2 = vmax.f32 %v424_v0, 0.0  ;;  %v1273_v3 = vpop.f32.mrb[14].mxu0 }
  0xfe   :  { %v439_v4 = vadd.f32 %v1273_v3, %v1828_v16  ;;  %v433_v5 = vpop.f32.mrb[15].mxu0 }
  0xff   :  { %v1857_v6 = vpack.c.bf16 %v695_v1, %v694_v2  ;;  %v434_v7 = vadd.f32 %v1828_v16, %v433_v5 }
 0x100   :  { %v697_v8 = vmax.f32 %v439_v4, 0.0 }
 0x101   :  { %v696_v9 = vmax.f32 %v434_v7, 0.0  ;;  %v1276_v10 = vpop.f32.mrb[16].mxu0 }
 0x102   :  { %v449_v11 = vadd.f32 %v1276_v10, %v1828_v16  ;;  %v443_v12 = vpop.f32.mrb[17].mxu0 }
 0x103   :  { %v1861_v13 = vpack.c.bf16 %v697_v8, %v696_v9  ;;  %v444_v15 = vadd.f32 %v1828_v16, %v443_v12 }
 0x104   :  { %v699_v17 = vmax.f32 %v449_v11, 0.0 }
 0x105   :  { %v698_v18 = vmax.f32 %v444_v15, 0.0  ;;  %v1279_v19 = vpop.f32.mrb[18].mxu0 }
 0x106   :  { %v459_v20 = vadd.f32 %v1279_v19, %v1828_v16  ;;  %v453_v21 = vpop.f32.mrb[19].mxu0  ;;  %v764_v19 = vcombine.high %v1832_v23, %v1832_v23 }
 0x107   :  { %v454_v22 = vadd.f32 %v1828_v16, %v453_v21  ;;  %v1389_v24 = vpack.c.bf16 %v699_v17, %v698_v18 }
 0x108   :  { %v701_v25 = vmax.f32 %v459_v20, 0.0 }
 0x109   :  { %v700_v26 = vmax.f32 %v454_v22, 0.0  ;;  %v1282_v27 = vpop.f32.mrb[20].mxu0  ;;  %1390 = vmatprep.subr.bf16.mxu1 %v1389_v24 }
 0x10a   :  { %v469_v28 = vadd.f32 %v1282_v27, %v1828_v16  ;;  %v463_v30 = vpop.f32.mrb[21].mxu0  ;;  %1392 = vmatpush3.bf16.msra.mxu1 %v1391_v29 }
 0x10b   :  { %v1393_v31 = vpack.c.bf16 %v701_v25, %v700_v26  ;;  %v464_v32 = vadd.f32 %v1828_v16, %v463_v30 }
 0x10c   :  { %v703_v33 = vmax.f32 %v469_v28, 0.0 }
 0x10d   :  { %v702_v34 = vmax.f32 %v464_v32, 0.0  ;;  %v1285_v36 = vpop.f32.mrb[22].mxu0  ;;  %1394 = vmatprep.subr.bf16.mxu1 %v1393_v31 }
 0x10e   :  { %v479_v37 = vadd.f32 %v1285_v36, %v1828_v16  ;;  %v473_v38 = vpop.f32.mrb[23].mxu0  ;;  %1396 = vmatpush3.bf16.msra.mxu1 %v1837_v35 }
 0x10f   :  { %v1397_v39 = vpack.c.bf16 %v703_v33, %v702_v34  ;;  %v474_v40 = vadd.f32 %v1828_v16, %v473_v38 }
 0x110   :  { %v705_v41 = vmax.f32 %v479_v37, 0.0 }
 0x111   :  { %v704_v43 = vmax.f32 %v474_v40, 0.0  ;;  %v1288_v44 = vpop.f32.mrb[24].mxu0  ;;  %1398 = vmatprep.subr.bf16.mxu1 %v1397_v39 }
 0x112   :  { %v489_v29 = vadd.f32 %v1288_v44, %v1828_v16  ;;  %v483_v45 = vpop.f32.mrb[25].mxu0  ;;  %1400 = vmatpush3.bf16.msra.mxu1 %v1841_v42 }
 0x113   :  { %v1401_v46 = vpack.c.bf16 %v705_v41, %v704_v43  ;;  %v484_v47 = vadd.f32 %v1828_v16, %v483_v45 }
 0x114   :  { %v707_v48 = vmax.f32 %v489_v29, 0.0 }
 0x115   :  { %v706_v50 = vmax.f32 %v484_v47, 0.0  ;;  %v1291_v51 = vpop.f32.mrb[26].mxu0  ;;  %1402 = vmatprep.subr.bf16.mxu1 %v1401_v46 }
 0x116   :  { %v499_v35 = vadd.f32 %v1291_v51, %v1828_v16  ;;  %v493_v52 = vpop.f32.mrb[27].mxu0  ;;  %1404 = vmatpush3.bf16.msra.mxu1 %v1845_v49 }
 0x117   :  { %v1405_v53 = vpack.c.bf16 %v707_v48, %v706_v50  ;;  %v494_v54 = vadd.f32 %v1828_v16, %v493_v52 }
 0x118   :  { %v709_v55 = vmax.f32 %v499_v35, 0.0 }
 0x119   :  { %v708_v57 = vmax.f32 %v494_v54, 0.0  ;;  %v1294_v58 = vpop.f32.mrb[28].mxu0  ;;  %1406 = vmatprep.subr.bf16.mxu1 %v1405_v53 }
 0x11a   :  { %v509_v42 = vadd.f32 %v1294_v58, %v1828_v16  ;;  %v503_v59 = vpop.f32.mrb[29].mxu0  ;;  %1408 = vmatpush3.bf16.msra.mxu1 %v1849_v56 }
 0x11b   :  { %v1409_v60 = vpack.c.bf16 %v709_v55, %v708_v57  ;;  %v504_v61 = vadd.f32 %v1828_v16, %v503_v59 }
 0x11c   :  { %v711_v62 = vmax.f32 %v509_v42, 0.0 }
 0x11d   :  { %v710_v0 = vmax.f32 %v504_v61, 0.0  ;;  %v1297_v1 = vpop.f32.mrb[30].mxu0  ;;  %1410 = vmatprep.subr.bf16.mxu1 %v1409_v60 }
 0x11e   :  { %v519_v49 = vadd.f32 %v1297_v1, %v1828_v16  ;;  %v513_v2 = vpop.f32.mrb[31].mxu0  ;;  %1412 = vmatpush3.bf16.msra.mxu1 %v1853_v63 }
 0x11f   :  { %v1413_v3 = vpack.c.bf16 %v711_v62, %v710_v0  ;;  %v514_v4 = vadd.f32 %v1828_v16, %v513_v2 }
 0x120   :  { %v713_v5 = vmax.f32 %v519_v49, 0.0 }
 0x121   :  { %v712_v7 = vmax.f32 %v514_v4, 0.0  ;;  %v1300_v8 = vpop.f32.mrb[32].mxu0  ;;  %1414 = vmatprep.subr.bf16.mxu1 %v1413_v3 }
 0x122   :  { %v529_v56 = vadd.f32 %v1300_v8, %v1828_v16  ;;  %v523_v9 = vpop.f32.mrb[33].mxu0  ;;  %1416 = vmatpush3.bf16.msra.mxu1 %v1857_v6 }
 0x123   :  { %v1417_v10 = vpack.c.bf16 %v713_v5, %v712_v7  ;;  %v524_v11 = vadd.f32 %v1828_v16, %v523_v9 }
 0x124   :  { %v715_v12 = vmax.f32 %v529_v56, 0.0 }
 0x125   :  { %v714_v15 = vmax.f32 %v524_v11, 0.0  ;;  %v1303_v17 = vpop.f32.mrb[34].mxu0  ;;  %1418 = vmatprep.subr.bf16.mxu1 %v1417_v10 }
 0x126   :  { %v539_v63 = vadd.f32 %v1303_v17, %v1828_v16  ;;  %v533_v18 = vpop.f32.mrb[35].mxu0  ;;  %1420 = vmatpush3.bf16.msra.mxu1 %v1861_v13 }
 0x127   :  { %v1890_v20 = vpack.c.bf16 %v715_v12, %v714_v15  ;;  %v534_v21 = vadd.f32 %v1828_v16, %v533_v18 }
 0x128   :  { %v717_v6 = vmax.f32 %v539_v63, 0.0 }
 0x129   :  { %v716_v22 = vmax.f32 %v534_v21, 0.0  ;;  %v1306_v24 = vpop.f32.mrb[36].mxu0  ;;  %834 = vmatmul.mubr.f32.vlgmr.msra.gmra.mrb[0].mxu1 %v1821_v14 }
 0x12a   :  { %v549_v25 = vadd.f32 %v1306_v24, %v1828_v16  ;;  %v543_v26 = vpop.f32.mrb[37].mxu0  ;;  %903 = vmatprep.mubr.f32.mxu1 %v764_v19 }
 0x12b   :  { %v1895_v27 = vpack.c.bf16 %v717_v6, %v716_v22  ;;  %v544_v13 = vadd.f32 %v1828_v16, %v543_v26 }
 0x12c   :  { %v719_v28 = vmax.f32 %v549_v25, 0.0 }
 0x12d   :  { %v718_v30 = vmax.f32 %v544_v13, 0.0  ;;  %v1309_v31 = vpop.f32.mrb[38].mxu0 }
 0x12e   :  { %v559_v32 = vadd.f32 %v1309_v31, %v1828_v16  ;;  %v553_v33 = vpop.f32.mrb[39].mxu0 }
 0x12f   :  { %v1899_v34 = vpack.c.bf16 %v719_v28, %v718_v30  ;;  %v554_v36 = vadd.f32 %v1828_v16, %v553_v33 }
 0x130   :  { %v721_v37 = vmax.f32 %v559_v32, 0.0 }
 0x131   :  { %v720_v14 = vmax.f32 %v554_v36, 0.0  ;;  %v1312_v38 = vpop.f32.mrb[40].mxu0 }
 0x132   :  { %v569_v39 = vadd.f32 %v1312_v38, %v1828_v16  ;;  %v563_v40 = vpop.f32.mrb[41].mxu0 }
 0x133   :  { %v1903_v41 = vpack.c.bf16 %v721_v37, %v720_v14  ;;  %v564_v43 = vadd.f32 %v1828_v16, %v563_v40 }
 0x134   :  { %v723_v44 = vmax.f32 %v569_v39, 0.0 }
 0x135   :  { %v722_v29 = vmax.f32 %v564_v43, 0.0  ;;  %v1315_v45 = vpop.f32.mrb[42].mxu0 }
 0x136   :  { %v579_v46 = vadd.f32 %v1315_v45, %v1828_v16  ;;  %v573_v47 = vpop.f32.mrb[43].mxu0 }
 0x137   :  { %v1907_v48 = vpack.c.bf16 %v723_v44, %v722_v29  ;;  %v574_v50 = vadd.f32 %v1828_v16, %v573_v47 }
 0x138   :  { %v725_v51 = vmax.f32 %v579_v46, 0.0 }
 0x139   :  { %v724_v35 = vmax.f32 %v574_v50, 0.0  ;;  %v1318_v52 = vpop.f32.mrb[44].mxu0 }
 0x13a   :  { %v589_v53 = vadd.f32 %v1318_v52, %v1828_v16  ;;  %v583_v54 = vpop.f32.mrb[45].mxu0 }
 0x13b   :  { %v1911_v55 = vpack.c.bf16 %v725_v51, %v724_v35  ;;  %v584_v57 = vadd.f32 %v1828_v16, %v583_v54 }
 0x13c   :  { %v727_v58 = vmax.f32 %v589_v53, 0.0 }
 0x13d   :  { %v726_v42 = vmax.f32 %v584_v57, 0.0  ;;  %v1321_v59 = vpop.f32.mrb[46].mxu0 }
 0x13e   :  { %v599_v60 = vadd.f32 %v1321_v59, %v1828_v16  ;;  %v593_v61 = vpop.f32.mrb[47].mxu0 }
 0x13f   :  { %v1915_v62 = vpack.c.bf16 %v727_v58, %v726_v42  ;;  %v594_v0 = vadd.f32 %v1828_v16, %v593_v61 }
 0x140   :  { %v729_v1 = vmax.f32 %v599_v60, 0.0 }
 0x141   :  { %v728_v49 = vmax.f32 %v594_v0, 0.0  ;;  %v1324_v2 = vpop.f32.mrb[48].mxu0  ;;  %v909_v0 = vld [vmem:[%s2012_s4] sm:$0xff] }
 0x142   :  { %v609_v3 = vadd.f32 %v1324_v2, %v1828_v16  ;;  %v603_v4 = vpop.f32.mrb[49].mxu0  ;;  %v913_v2 = vld [vmem:[%s2012_s4 + $0x20] sm:$0xff] }
 0x143   :  { %v1919_v5 = vpack.c.bf16 %v729_v1, %v728_v49  ;;  %v604_v7 = vadd.f32 %v1828_v16, %v603_v4  ;;  %v1508_v1 = vmov 0.0|0.0   ;;  %v912_v49 = vld [vmem:[%s2012_s4 + $0x18] sm:$0xff] }
 0x144   :  { %v731_v8 = vmax.f32 %v609_v3, 0.0  ;;  %v914_v3 = vld [vmem:[%s2012_s4 + $0x28] sm:$0xff] }
 0x145   :  { %v730_v56 = vmax.f32 %v604_v7, 0.0  ;;  %v1327_v9 = vpop.f32.mrb[50].mxu0  ;;  %v1460_v4 = vpack.c.bf16 %v914_v3, %v913_v2  ;;  %v916_v7 = vld [vmem:[%s2012_s4 + $0x38] sm:$0xff] }
 0x146   :  { %v619_v10 = vadd.f32 %v1327_v9, %v1828_v16  ;;  %v613_v11 = vpop.f32.mrb[51].mxu0  ;;  %v918_v9 = vld [vmem:[%s2012_s4 + $0x48] sm:$0xff] }
 0x147   :  { %v1421_v12 = vpack.c.bf16 %v731_v8, %v730_v56  ;;  %v614_v15 = vadd.f32 %v1828_v16, %v613_v11  ;;  %v917_v56 = vld [vmem:[%s2012_s4 + $0x40] sm:$0xff]  ;;  %v919_v11 = vld [vmem:[%s2012_s4 + $0x50] sm:$0xff] }
 0x148   :  { %v733_v17 = vmax.f32 %v619_v10, 0.0  ;;  %v1466_v10 = vpack.c.bf16 %v918_v9, %v917_v56 }
 0x149   :  { %v732_v63 = vmax.f32 %v614_v15, 0.0  ;;  %v1330_v18 = vpop.f32.mrb[52].mxu0  ;;  %1422 = vmatprep.subr.bf16.mxu1 %v1421_v12  ;;  %v920_v12 = vld [vmem:[%s2012_s4 + $0x58] sm:$0xff] }
 0x14a   :  { %v629_v19 = vadd.f32 %v1330_v18, %v1828_v16  ;;  %v623_v21 = vpop.f32.mrb[53].mxu0  ;;  %1424 = vmatpush3.bf16.msra.mxu1 %v1890_v20  ;;  %v1469_v15 = vpack.c.bf16 %v920_v12, %v919_v11 }
 0x14b   :  { %v1425_v6 = vpack.c.bf16 %v733_v17, %v732_v63  ;;  %v624_v22 = vadd.f32 %v1828_v16, %v623_v21  ;;  %v921_v17 = vld [vmem:[%s2012_s4 + $0x60] sm:$0xff]  ;;  %v922_v63 = vld [vmem:[%s2012_s4 + $0x68] sm:$0xff]  ;;  %v924_v21 = vld [vmem:[%s2012_s4 + $0x78] sm:$0xff] }
 0x14c   :  { %v735_v24 = vmax.f32 %v629_v19, 0.0  ;;  %v1472_v18 = vpack.c.bf16 %v922_v63, %v921_v17  ;;  %v923_v19 = vld [vmem:[%s2012_s4 + $0x70] sm:$0xff] }
 0x14d   :  { %v734_v25 = vmax.f32 %v624_v22, 0.0  ;;  %v1333_v26 = vpop.f32.mrb[54].mxu0  ;;  %1426 = vmatprep.subr.bf16.mxu1 %v1425_v6  ;;  %v1475_v6 = vpack.c.bf16 %v924_v21, %v923_v19  ;;  %v1510_v22 = vmov 0.0  }
 0x14e   :  { %v639_v13 = vadd.f32 %v1333_v26, %v1828_v16  ;;  %v633_v28 = vpop.f32.mrb[55].mxu0  ;;  %1428 = vmatpush3.bf16.msra.mxu1 %v1895_v27 }
 0x14f   :  { %v1429_v30 = vpack.c.bf16 %v735_v24, %v734_v25  ;;  %v634_v31 = vadd.f32 %v1828_v16, %v633_v28 }
 0x150   :  { %v737_v32 = vmax.f32 %v639_v13, 0.0 }
 0x151   :  { %v736_v33 = vmax.f32 %v634_v31, 0.0  ;;  %v1336_v36 = vpop.f32.mrb[56].mxu0  ;;  %1430 = vmatprep.subr.bf16.mxu1 %v1429_v30 }
 0x152   :  { %v649_v20 = vadd.f32 %v1336_v36, %v1828_v16  ;;  %v643_v37 = vpop.f32.mrb[57].mxu0  ;;  %1432 = vmatpush3.bf16.msra.mxu1 %v1899_v34 }
 0x153   :  { %v1433_v14 = vpack.c.bf16 %v737_v32, %v736_v33  ;;  %v644_v38 = vadd.f32 %v1828_v16, %v643_v37  ;;  %v1083_v32 = vld [vmem:[%s2013_s5] ss:$0 sm:$0xff] }
 0x154   :  { %v739_v39 = vmax.f32 %v649_v20, 0.0 }
 0x155   :  { %v738_v40 = vmax.f32 %v644_v38, 0.0  ;;  %v1339_v43 = vpop.f32.mrb[58].mxu0  ;;  %1434 = vmatprep.subr.bf16.mxu1 %v1433_v14 }
 0x156   :  { %v659_v27 = vadd.f32 %v1339_v43, %v1828_v16  ;;  %v653_v44 = vpop.f32.mrb[59].mxu0  ;;  %1436 = vmatpush3.bf16.msra.mxu1 %v1903_v41 }
 0x157   :  { %v1437_v29 = vpack.c.bf16 %v739_v39, %v738_v40  ;;  %v654_v45 = vadd.f32 %v1828_v16, %v653_v44 }
 0x158   :  { %v741_v46 = vmax.f32 %v659_v27, 0.0 }
 0x159   :  { %v740_v47 = vmax.f32 %v654_v45, 0.0  ;;  %v1342_v50 = vpop.f32.mrb[60].mxu0  ;;  %1438 = vmatprep.subr.bf16.mxu1 %v1437_v29 }
 0x15a   :  { %v669_v34 = vadd.f32 %v1342_v50, %v1828_v16  ;;  %v663_v51 = vpop.f32.mrb[61].mxu0  ;;  %1440 = vmatpush3.bf16.msra.mxu1 %v1907_v48 }
 0x15b   :  { %v1441_v35 = vpack.c.bf16 %v741_v46, %v740_v47  ;;  %v664_v52 = vadd.f32 %v1828_v16, %v663_v51 }
 0x15c   :  { %v743_v53 = vmax.f32 %v669_v34, 0.0 }
 0x15d   :  { %v742_v54 = vmax.f32 %v664_v52, 0.0  ;;  %v1345_v57 = vpop.f32.mrb[62].mxu0  ;;  %1442 = vmatprep.subr.bf16.mxu1 %v1441_v35 }
 0x15e   :  { %v679_v41 = vadd.f32 %v1345_v57, %v1828_v16  ;;  %v673_v58 = vpop.f32.mrb[63].mxu0  ;;  %1444 = vmatpush3.bf16.msra.mxu1 %v1911_v55  ;;  %v910_v55 = vld [vmem:[%s2012_s4 + $0x8] sm:$0xff] }
 0x15f   :  { %v1445_v42 = vpack.c.bf16 %v743_v53, %v742_v54  ;;  %v674_v59 = vadd.f32 %v1828_v16, %v673_v58  ;;  %v911_v16 = vld [vmem:[%s2012_s4 + $0x10] sm:$0xff] }
 0x160   :  { %v745_v60 = vmax.f32 %v679_v41, 0.0 }
 0x161   :  { %v744_v61 = vmax.f32 %v674_v59, 0.0  ;;  %1446 = vmatprep.subr.bf16.mxu1 %v1445_v42 }
 0x162   :  { %1448 = vmatpush3.bf16.msra.mxu1 %v1915_v62  ;;  %v1454_v62 = vpack.c.bf16 %v910_v55, %v909_v0 }
 0x163   :  { %v1449_v48 = vpack.c.bf16 %v745_v60, %v744_v61 }
 0x165   :  { %1450 = vmatprep.subr.bf16.mxu1 %v1449_v48 }
 0x166   :  { %1452 = vmatpush3.bf16.msra.mxu1 %v1919_v5  ;;  %v915_v5 = vld [vmem:[%s2012_s4 + $0x30] sm:$0xff]  ;;  %s1483_s4 = scalar_lea.vmem %s1010_s17, 32 }
 0x167   :  { %1453 = vmatprep.subr.bf16.mxu1 %v1508_v1  ;;  %v1463_v8 = vpack.c.bf16 %v916_v7, %v915_v5  ;;  %p1484_p0 = scmp.ne.s32.totalorder %s1010_s17, %s1483_s4  ;;  %p1489_p2 = scmp.lt.s32.totalorder %s1483_s4, %s1483_s4 }
 0x169   :  { %904 = vmatmul.mubr.f32.vlgmr.msra.gmra.mrb[2].mxu1 %v1832_v23  ;;  %v1457_v23 = vpack.c.bf16 %v912_v49, %v911_v16  ;;  %p1490_p3 = por %p1489_p2, %p1488_p1 }
 0x16a   :  { %1455 = vmatpush3.bf16.msra.mxu1 %v1454_v62  ;;  %1378 = vmatprep.mubr.msk.f32.mxu1 %vm1509_vm2, %v1510_v22 }
 0x16b   :  { %1456 = vmatprep.subr.bf16.mxu1 %v1508_v1  ;;  %p1491_p4 = pnand %p1490_p3, %p1484_p0 }
 0x16e   :  { %1458 = vmatpush3.bf16.msra.mxu1 %v1457_v23 }
 0x16f   :  { %1459 = vmatprep.subr.bf16.mxu1 %v1508_v1 }
 0x172   :  { %1461 = vmatpush3.bf16.msra.mxu1 %v1460_v4 }
 0x173   :  { %1462 = vmatprep.subr.bf16.mxu1 %v1508_v1 }
 0x176   :  { %1464 = vmatpush3.bf16.msra.mxu1 %v1463_v8 }
 0x177   :  { %1465 = vmatprep.subr.bf16.mxu1 %v1508_v1 }
 0x17a   :  { %1467 = vmatpush3.bf16.msra.mxu1 %v1466_v10 }
 0x17b   :  { %1468 = vmatprep.subr.bf16.mxu1 %v1508_v1 }
 0x17e   :  { %1470 = vmatpush3.bf16.msra.mxu1 %v1469_v15 }
 0x17f   :  { %1471 = vmatprep.subr.bf16.mxu1 %v1508_v1 }
 0x182   :  { %1473 = vmatpush3.bf16.msra.mxu1 %v1472_v18 }
 0x183   :  { %1474 = vmatprep.subr.bf16.mxu1 %v1508_v1 }
 0x186   :  { %1476 = vmatpush3.bf16.msra.mxu1 %v1475_v6 }
 0x1fc   :  { %v1185_v24 = vpop.f32.mrb[0].mxu1 }
 0x1fd   :  { %v1186_v25 = vpop.f32.mrb[1].mxu1 }
 0x1fe   :  { %v1187_v26 = vadd.f32 %v1186_v25, %v1185_v24 }
 0x23c   :  { %v1220_v13 = vpop.f32.mrb[2].mxu1 }
 0x23d   :  { %v1221_v28 = vpop.f32.mrb[3].mxu1 }
 0x23e   :  { %v1222_v30 = vadd.f32 %v1221_v28, %v1220_v13 }
 0x240   :  { %v906_v31 = vadd.f32 %v1222_v30, %v1187_v26 }
 0x242   :  { %1379 = vmatmul.mubr.f32.vlgmr.msra.gmra.mrb[4].mxu1 %v906_v31 }
 0x315   :  { %v998_v33 = vpop.f32.mrb[4].mxu1 }
 0x316   :  { %v999_v36 = vadd.f32 %v1083_v32, %v998_v33  ;;  %v1380_v20 = vpop.f32.mrb[5].mxu1 }
 0x318   :  { %1002 = vst [vmem:[#allocation2] sm:$0x3] %v999_v36 }
 0x319   :  { %1494 = shalt.err (!%p1491_p4)
}
 0x31a   :  { %s1495_s20 = scalar_lea.hbm %s2014_s6, 32 }
 0x31b   :  { %p1496_p5 = scmp.ne.s32.totalorder %s2014_s6, %s1495_s20  ;;  %p1499_p6 = scmp.lt.u32.totalorder %s1495_s20, %s2014_s6 }
 0x31d   :  { %p1501_p7 = pnand %p1499_p6, %p1496_p5 }
 0x31f   :  { %1504 = shalt.err (!%p1501_p7)
}
 0x320   :  { %1012 = dma.vmem_to_hbm [thread:$0]  %s1010_s17, 32, %s2014_s6, [#allocation3]  }
 0x321   :  { %1505 = dma.done.wait [#allocation3], 32  }
 0x322   :  { %1506 = vsyncadd [#allocation3], 4294967264 }
 0x323   :  { %1016 = vsyncpa [#allocation3], 1 }

</bundles_post_ra>
